<compile_context>
chip_gen: v7x
topology: tpu7x:2x2x1
jax: 0.10.0
libtpu: 0.0.40
codegen_flags: <defaults>
</compile_context>

<pallas_src>
import functools

import jax
import jax.numpy as jnp
from jax import lax
from jax.experimental import pallas as pl
from jax.experimental.pallas import tpu as pltpu


def _round_up(x, m):
    return (x + m - 1) // m * m


def _mingru_mlp_kernel(nlayers, num_emb, h_pad, *refs):
    """One batch tile: embedding select + fused-gate minGRU stack + out proj."""
    if nlayers > 1:
        (x_ref, t_ref, w0x_ref, w0e_ref, wst_ref, bst_ref,
         wo_ref, bo_ref, out_ref) = refs
    else:
        (x_ref, t_ref, w0x_ref, w0e_ref, wo_ref, bo_ref, out_ref) = refs
        wst_ref = bst_ref = None

    H = h_pad
    tb = x_ref.shape[0]

    # MXU inputs in bf16 (single-pass matmul, f32 accumulate).
    x16 = x_ref[...].astype(jnp.bfloat16)                 # [TB, M]
    t = t_ref[...]                                        # [TB, 1] int32

    # onehot(t) selects rows of the pre-folded (emb @ W0_t + b0) block ->
    # exact nn.Embedding gather + t-block matmul + layer-0 bias without the
    # T x T table in VMEM.  Fine for small T (here T=16).
    iota = lax.broadcasted_iota(jnp.int32, (tb, num_emb), 1)
    onehot = (iota == t).astype(jnp.bfloat16)             # [TB, num_emb]

    # Layer 0: fused z / h~ gates (bias already folded into w0e).
    g = (jnp.dot(x16, w0x_ref[...], preferred_element_type=jnp.float32)
         + jnp.dot(onehot, w0e_ref[...], preferred_element_type=jnp.float32))
    # Lane-aligned gate split (H is a multiple of 128); minGRU step, h_prev=0.
    h = jax.nn.sigmoid(g[:, :H]) * g[:, H:]

    # Layers 1..nlayers-1: small L -> static unroll (LLO scheduler visibility).
    for i in range(nlayers - 1):
        g = (jnp.dot(h.astype(jnp.bfloat16), wst_ref[i],
                     preferred_element_type=jnp.float32) + bst_ref[i])
        h = jax.nn.sigmoid(g[:, :H]) * g[:, H:]

    # Output projection (unpadded N: tiny M -> avoid HBM write amplification).
    out = (jnp.dot(h.astype(jnp.bfloat16), wo_ref[...],
                   preferred_element_type=jnp.float32) + bo_ref[...])
    out_ref[...] = out.astype(out_ref.dtype)


def init_params(key, M, nhidden, nlayers, timesteps):
    """Deterministic synthetic parameters matching the module's shapes."""
    n_keys = 1 + 4 * nlayers + 2
    keys = jax.random.split(key, n_keys)
    k = iter(keys)
    scale = 0.02
    params = {"emb": jax.random.normal(next(k), (timesteps, timesteps), jnp.float32)}
    layers = []
    din = M + timesteps
    for _ in range(nlayers):
        wz = scale * jax.random.normal(next(k), (din, nhidden), jnp.float32)
        bz = scale * jax.random.normal(next(k), (nhidden,), jnp.float32)
        wh = scale * jax.random.normal(next(k), (din, nhidden), jnp.float32)
        bh = scale * jax.random.normal(next(k), (nhidden,), jnp.float32)
        layers.append((wz, bz, wh, bh))
        din = nhidden
    params["layers"] = layers
    params["wo"] = scale * jax.random.normal(next(k), (nhidden, M), jnp.float32)
    params["bo"] = scale * jax.random.normal(next(k), (M,), jnp.float32)
    return params


def pack_params(params, M, *, weight_dtype=jnp.bfloat16, lane=128):
    """One-time weight preprocessing: gate fusion + lane alignment, embedding
    and layer-0-bias fold, hidden-dim padding. Pad rows/cols are zeros, so the
    padded hidden units stay exactly zero through every layer."""
    hp = jax.lax.Precision.HIGHEST
    emb = params["emb"].astype(jnp.float32)                # [num_emb, emb_dim]
    num_emb = emb.shape[0]
    layers = params["layers"]
    nlayers = len(layers)
    H = layers[0][0].shape[1]
    H_pad = _round_up(H, lane)                             # lane-aligned gate halves

    def pack_gate_w(wz, wh, din_pad=None):
        din = wz.shape[0]
        dp = din if din_pad is None else din_pad
        w = jnp.zeros((dp, 2 * H_pad), jnp.float32)
        w = w.at[:din, :H].set(wz)
        w = w.at[:din, H_pad:H_pad + H].set(wh)
        return w

    def pack_gate_b(bz, bh):
        b = jnp.zeros((1, 2 * H_pad), jnp.float32)
        b = b.at[0, :H].set(bz)
        b = b.at[0, H_pad:H_pad + H].set(bh)
        return b

    wz0, bz0, wh0, bh0 = layers[0]
    w0x = pack_gate_w(wz0[:M], wh0[:M])                    # [M, 2*H_pad]
    w0t = pack_gate_w(wz0[M:], wh0[M:])                    # [T, 2*H_pad]
    b0 = pack_gate_b(bz0, bh0)
    # Fold emb AND the layer-0 bias into the time block: every one-hot row sums
    # to 1, so onehot @ (emb @ W_t + b0) == emb[t] @ W_t + b0.
    w0e = jnp.dot(emb, w0t, precision=hp) + b0             # [num_emb, 2*H_pad]

    packed = {
        "w0x": w0x.astype(weight_dtype),
        "w0e": w0e.astype(weight_dtype),
        "nlayers": nlayers,
        "num_emb": num_emb,
        "nhidden": H,
        "h_pad": H_pad,
        "M": M,
    }

    if nlayers > 1:
        wst = jnp.stack([pack_gate_w(wz, wh, din_pad=H_pad)
                         for (wz, _, wh, _) in layers[1:]])    # [L-1, H_pad, 2*H_pad]
        bst = jnp.stack([pack_gate_b(bz, bh)
                         for (_, bz, _, bh) in layers[1:]])    # [L-1, 1, 2*H_pad]
        packed["wst"] = wst.astype(weight_dtype)
        packed["bst"] = bst.astype(jnp.float32)                # biases stay f32

    # Output projection: pad the hidden rows to H_pad only (columns stay = M;
    # for tiny M a lane-padded output would inflate the HBM output write 32x).
    wo = jnp.zeros((H_pad, M), jnp.float32).at[:H].set(params["wo"])
    packed["wo"] = wo.astype(weight_dtype)
    packed["bo"] = params["bo"].reshape(1, M).astype(jnp.float32)
    return packed


def _choose_batch_tiling(B, batch_tile):
    """Pick (TB, B_pad): sublane-aligned tiles, minimal padding, and grid >= 2
    whenever the batch is big enough (v7x megacore)."""
    if B < 16:
        return B, B                            # one full-batch tile, no padding
    b8 = _round_up(B, 8)
    tb = min(_round_up(batch_tile, 8), _round_up((b8 + 1) // 2, 8))
    # Prefer a TB that divides B exactly (no wrapper pad copy) if one is close.
    cand = tb
    while cand >= 8:
        if B % cand == 0:
            return cand, B
        if cand <= tb - 64:
            break
        cand -= 8
    return tb, _round_up(B, tb)


def mingru_mlp_forward(packed, x_t, t, *, batch_tile=1024):
    B, M = x_t.shape
    assert M == packed["M"]
    H_pad = packed["h_pad"]
    L = packed["nlayers"]
    num_emb = packed["num_emb"]

    TB, B_pad = _choose_batch_tiling(B, batch_tile)
    grid = (B_pad // TB,)

    x_in = x_t.astype(jnp.float32)
    t_in = t.astype(jnp.int32).reshape(B, 1)
    if B_pad != B:
        # Only pad when the tiling requires it (each pad is an extra HBM copy).
        x_in = jnp.zeros((B_pad, M), jnp.float32).at[:B].set(x_in)
        t_in = jnp.zeros((B_pad, 1), jnp.int32).at[:B].set(t_in)

    weight_args = [packed["w0x"], packed["w0e"]]
    if L > 1:
        weight_args += [packed["wst"], packed["bst"]]
    weight_args += [packed["wo"], packed["bo"]]
    args = [x_in, t_in] + weight_args

    kernel = functools.partial(_mingru_mlp_kernel, L, num_emb, H_pad)

    weight_bytes = int(sum(a.size * a.dtype.itemsize for a in weight_args))
    tile_io_bytes = TB * M * 4 + TB * 4 + TB * M * 4
    scratch_bytes = 4 * TB * 2 * H_pad * 4            # g / h intermediates (f32)
    flops = int(2 * B_pad * (M * 2 * H_pad + num_emb * 2 * H_pad
                             + (L - 1) * H_pad * 2 * H_pad + H_pad * M))
    cost = pl.CostEstimate(
        flops=flops,
        transcendentals=int(B_pad * H_pad * L),
        bytes_accessed=int(weight_bytes + B_pad * (2 * M + 1) * 4))

    try:  # query real VMEM capacity (v5e/v6e 128 MiB, v7x 64 MiB per TC)
        vmem_cap = int(pltpu.get_tpu_info().vmem_capacity_bytes)
    except Exception:
        vmem_cap = 64 << 20

    def build(single_buffer_weights):
        def resident(arr):
            # Weight stays VMEM-resident across all batch tiles (constant block
            # index); single-buffered when supported (double buffering a
            # never-changing block only wastes VMEM).
            n = arr.ndim
            if single_buffer_weights:
                return pl.BlockSpec(arr.shape, lambda b, _n=n: (0,) * _n,
                                    pipeline_mode=pl.Buffered(1))
            return pl.BlockSpec(arr.shape, lambda b, _n=n: (0,) * _n)

        in_specs = [pl.BlockSpec((TB, M), lambda b: (b, 0)),
                    pl.BlockSpec((TB, 1), lambda b: (b, 0))]
        in_specs += [resident(a) for a in weight_args]
        out_specs = pl.BlockSpec((TB, M), lambda b: (b, 0))

        wmul = 1 if single_buffer_weights else 2
        need = wmul * weight_bytes + 4 * tile_io_bytes + scratch_bytes + (8 << 20)
        vmem_limit = int(max(min(need, vmem_cap - (8 << 20)), 16 << 20))

        return pl.pallas_call(
            kernel,
            grid=grid,
            out_shape=jax.ShapeDtypeStruct((B_pad, M), jnp.float32),
            in_specs=in_specs,
            out_specs=out_specs,
            compiler_params=pltpu.CompilerParams(
                dimension_semantics=("parallel",),
                vmem_limit_bytes=vmem_limit),
            cost_estimate=cost,
        )

    try:
        out = build(True)(*args)
    except Exception:
        # pipeline_mode=pl.Buffered(1) unsupported on this jax/libtpu combo:
        # fall back to default (double-buffered) resident weights.
        out = build(False)(*args)

    return out[:B] if B_pad != B else out


def mingru_mlp_reference(params, x_t, t):
    """Pure-JAX f32 reference of the same forward pass (correctness check)."""
    hp = jax.lax.Precision.HIGHEST
    t_embed = params["emb"][t]                      # [B, T]
    h = jnp.concatenate([x_t, t_embed], axis=1)     # [B, M+T]
    for (wz, bz, wh, bh) in params["layers"]:
        z = jax.nn.sigmoid(jnp.dot(h, wz, precision=hp) + bz)
        h_tilde = jnp.dot(h, wh, precision=hp) + bh
        h = z * h_tilde
    return jnp.dot(h, params["wo"], precision=hp) + params["bo"]


if __name__ == "__main__":
    M, nhidden, nlayers, timesteps = 4, 32, 2, 16
    batch = 2

    key = jax.random.PRNGKey(0)
    kp, kx, kt = jax.random.split(key, 3)

    params = init_params(kp, M, nhidden, nlayers, timesteps)
    x_t = jax.random.normal(kx, (batch, M), jnp.float32)
    t = jax.random.randint(kt, (batch,), 0, timesteps, jnp.int32)

    packed = pack_params(params, M)
    out = jax.block_until_ready(mingru_mlp_forward(packed, x_t, t))

    ref = mingru_mlp_reference(params, x_t, t)
    assert out.shape == (batch, M)
    # bf16 weights / MXU inputs (f32 accumulate) -> deliberately loosened tol
    # vs the pure-f32 reference.
    assert jnp.allclose(out, ref, atol=2e-3, rtol=2e-2), (
        "mismatch vs reference, max |d| = "
        f"{float(jnp.max(jnp.abs(out - ref)))}")
    print("KERNEL_OK")
</pallas_src>

<mosaic_0001>
module attributes {stable_mosaic.version = 11 : i64} {
  func.func @_mingru_mlp_kernel(%arg0: i32, %arg1: memref<2x4xf32, #tpu.memory_space<vmem>>, %arg2: memref<2x1xi32, #tpu.memory_space<vmem>>, %arg3: memref<4x256xbf16, #tpu.memory_space<vmem>>, %arg4: memref<16x256xbf16, #tpu.memory_space<vmem>>, %arg5: memref<1x128x256xbf16, #tpu.memory_space<vmem>>, %arg6: memref<1x1x256xf32, #tpu.memory_space<vmem>>, %arg7: memref<128x4xbf16, #tpu.memory_space<vmem>>, %arg8: memref<1x4xf32, #tpu.memory_space<vmem>>, %arg9: memref<2x4xf32, #tpu.memory_space<vmem>>) attributes {dimension_semantics = [#tpu.dimension_semantics<parallel>], iteration_bounds = array<i64: 1>, scalar_prefetch = 0 : i64, scratch_operands = 0 : i64, tpu.core_type = #tpu.core_type<tc>, window_params = [{transform_indices = @transform_0, window_bounds = array<i64: 2, 4>}, {transform_indices = @transform_1, window_bounds = array<i64: 2, 1>}, {pipeline_mode = #tpu.pipeline_mode<synchronous>, transform_indices = @transform_2, window_bounds = array<i64: 4, 256>}, {pipeline_mode = #tpu.pipeline_mode<synchronous>, transform_indices = @transform_3, window_bounds = array<i64: 16, 256>}, {pipeline_mode = #tpu.pipeline_mode<synchronous>, transform_indices = @transform_4, window_bounds = array<i64: 1, 128, 256>}, {pipeline_mode = #tpu.pipeline_mode<synchronous>, transform_indices = @transform_5, window_bounds = array<i64: 1, 1, 256>}, {pipeline_mode = #tpu.pipeline_mode<synchronous>, transform_indices = @transform_6, window_bounds = array<i64: 128, 4>}, {pipeline_mode = #tpu.pipeline_mode<synchronous>, transform_indices = @transform_7, window_bounds = array<i64: 1, 4>}, {transform_indices = @transform_8, window_bounds = array<i64: 2, 4>}]} {
    %c0 = arith.constant 0 : index
    %c0_0 = arith.constant 0 : index
    %0 = vector.load %arg1[%c0, %c0_0] : memref<2x4xf32, #tpu.memory_space<vmem>>, vector<2x4xf32>
    %1 = arith.truncf %0 : vector<2x4xf32> to vector<2x4xbf16>
    %c0_1 = arith.constant 0 : index
    %c0_2 = arith.constant 0 : index
    %2 = vector.load %arg2[%c0_1, %c0_2] : memref<2x1xi32, #tpu.memory_space<vmem>>, vector<2x1xi32>
    %3 = tpu.iota {dimensions = array<i32: 1>} : vector<2x16xi32>
    %4 = vector.broadcast %2 : vector<2x1xi32> to vector<2x16xi32>
    %5 = arith.cmpi eq, %3, %4 : vector<2x16xi32>
    %6 = arith.extui %5 : vector<2x16xi1> to vector<2x16xi32>
    %7 = arith.sitofp %6 : vector<2x16xi32> to vector<2x16xf32>
    %8 = arith.truncf %7 : vector<2x16xf32> to vector<2x16xbf16>
    %c0_3 = arith.constant 0 : index
    %c0_4 = arith.constant 0 : index
    %9 = vector.load %arg3[%c0_3, %c0_4] : memref<4x256xbf16, #tpu.memory_space<vmem>>, vector<4x256xbf16>
    %cst = arith.constant dense<0.000000e+00> : vector<2x256xf32>
    %10 = tpu.matmul %1, %9, %cst {dimension_numbers = #tpu.dot_dimension_numbers<[1], [0], [0], [1], [0, 0, 1, 1], [], []>} : vector<2x4xbf16>, vector<4x256xbf16>, vector<2x256xf32> -> vector<2x256xf32>
    %c0_5 = arith.constant 0 : index
    %c0_6 = arith.constant 0 : index
    %11 = vector.load %arg4[%c0_5, %c0_6] : memref<16x256xbf16, #tpu.memory_space<vmem>>, vector<16x256xbf16>
    %cst_7 = arith.constant dense<0.000000e+00> : vector<2x256xf32>
    %12 = tpu.matmul %8, %11, %cst_7 {dimension_numbers = #tpu.dot_dimension_numbers<[1], [0], [0], [1], [0, 0, 1, 1], [], []>} : vector<2x16xbf16>, vector<16x256xbf16>, vector<2x256xf32> -> vector<2x256xf32>
    %13 = arith.addf %10, %12 : vector<2x256xf32>
    %14 = vector.extract_strided_slice %13 {offsets = [0, 0], sizes = [2, 128], strides = [1, 1]} : vector<2x256xf32> to vector<2x128xf32>
    %15 = arith.negf %14 : vector<2x128xf32>
    %16 = math.exp %15 : vector<2x128xf32>
    %cst_8 = arith.constant 1.000000e+00 : f32
    %17 = vector.broadcast %cst_8 : f32 to vector<2x128xf32>
    %18 = arith.addf %17, %16 : vector<2x128xf32>
    %19 = arith.divf %17, %18 : vector<2x128xf32>
    %20 = vector.extract_strided_slice %13 {offsets = [0, 128], sizes = [2, 128], strides = [1, 1]} : vector<2x256xf32> to vector<2x128xf32>
    %21 = arith.mulf %19, %20 : vector<2x128xf32>
    %22 = arith.truncf %21 : vector<2x128xf32> to vector<2x128xbf16>
    %c0_9 = arith.constant 0 : index
    %c0_10 = arith.constant 0 : index
    %c0_11 = arith.constant 0 : index
    %23 = vector.load %arg5[%c0_9, %c0_10, %c0_11] : memref<1x128x256xbf16, #tpu.memory_space<vmem>>, vector<1x128x256xbf16>
    %24 = vector.shape_cast %23 : vector<1x128x256xbf16> to vector<128x256xbf16>
    %cst_12 = arith.constant dense<0.000000e+00> : vector<2x256xf32>
    %25 = tpu.matmul %22, %24, %cst_12 {dimension_numbers = #tpu.dot_dimension_numbers<[1], [0], [0], [1], [0, 0, 1, 1], [], []>} : vector<2x128xbf16>, vector<128x256xbf16>, vector<2x256xf32> -> vector<2x256xf32>
    %c0_13 = arith.constant 0 : index
    %c0_14 = arith.constant 0 : index
    %c0_15 = arith.constant 0 : index
    %26 = vector.load %arg6[%c0_13, %c0_14, %c0_15] : memref<1x1x256xf32, #tpu.memory_space<vmem>>, vector<1x1x256xf32>
    %27 = vector.shape_cast %26 : vector<1x1x256xf32> to vector<1x256xf32>
    %28 = vector.broadcast %27 : vector<1x256xf32> to vector<2x256xf32>
    %29 = arith.addf %25, %28 : vector<2x256xf32>
    %30 = vector.extract_strided_slice %29 {offsets = [0, 0], sizes = [2, 128], strides = [1, 1]} : vector<2x256xf32> to vector<2x128xf32>
    %31 = arith.negf %30 : vector<2x128xf32>
    %32 = math.exp %31 : vector<2x128xf32>
    %cst_16 = arith.constant 1.000000e+00 : f32
    %33 = vector.broadcast %cst_16 : f32 to vector<2x128xf32>
    %34 = arith.addf %33, %32 : vector<2x128xf32>
    %35 = arith.divf %33, %34 : vector<2x128xf32>
    %36 = vector.extract_strided_slice %29 {offsets = [0, 128], sizes = [2, 128], strides = [1, 1]} : vector<2x256xf32> to vector<2x128xf32>
    %37 = arith.mulf %35, %36 : vector<2x128xf32>
    %38 = arith.truncf %37 : vector<2x128xf32> to vector<2x128xbf16>
    %c0_17 = arith.constant 0 : index
    %c0_18 = arith.constant 0 : index
    %39 = vector.load %arg7[%c0_17, %c0_18] : memref<128x4xbf16, #tpu.memory_space<vmem>>, vector<128x4xbf16>
    %cst_19 = arith.constant dense<0.000000e+00> : vector<2x4xf32>
    %40 = tpu.matmul %38, %39, %cst_19 {dimension_numbers = #tpu.dot_dimension_numbers<[1], [0], [0], [1], [0, 0, 1, 1], [], []>} : vector<2x128xbf16>, vector<128x4xbf16>, vector<2x4xf32> -> vector<2x4xf32>
    %c0_20 = arith.constant 0 : index
    %c0_21 = arith.constant 0 : index
    %41 = vector.load %arg8[%c0_20, %c0_21] : memref<1x4xf32, #tpu.memory_space<vmem>>, vector<1x4xf32>
    %42 = vector.broadcast %41 : vector<1x4xf32> to vector<2x4xf32>
    %43 = arith.addf %40, %42 : vector<2x4xf32>
    %c0_22 = arith.constant 0 : index
    %c0_23 = arith.constant 0 : index
    %44 = vector.load %arg9[%c0_22, %c0_23] : memref<2x4xf32, #tpu.memory_space<vmem>>, vector<2x4xf32>
    tpu.vector_store %arg9[%c0_22, %c0_23], %43 {strides = array<i32>} : memref<2x4xf32, #tpu.memory_space<vmem>>, vector<2x4xf32>,
    return
  }
  func.func @transform_0(%arg0: i32) -> (i32, i32) {
    %c0_i32 = arith.constant 0 : i32
    %c0_i32_0 = arith.constant 0 : i32
    return %arg0, %c0_i32 : i32, i32
  }
  func.func @transform_1(%arg0: i32) -> (i32, i32) {
    %c0_i32 = arith.constant 0 : i32
    %c0_i32_0 = arith.constant 0 : i32
    return %arg0, %c0_i32 : i32, i32
  }
  func.func @transform_2(%arg0: i32) -> (i32, i32) {
    %c0_i32 = arith.constant 0 : i32
    %c0_i32_0 = arith.constant 0 : i32
    %c0_i32_1 = arith.constant 0 : i32
    return %c0_i32, %c0_i32_0 : i32, i32
  }
  func.func @transform_3(%arg0: i32) -> (i32, i32) {
    %c0_i32 = arith.constant 0 : i32
    %c0_i32_0 = arith.constant 0 : i32
    %c0_i32_1 = arith.constant 0 : i32
    return %c0_i32, %c0_i32_0 : i32, i32
  }
  func.func @transform_4(%arg0: i32) -> (i32, i32, i32) {
    %c0_i32 = arith.constant 0 : i32
    %c0_i32_0 = arith.constant 0 : i32
    %c0_i32_1 = arith.constant 0 : i32
    %c0_i32_2 = arith.constant 0 : i32
    return %c0_i32, %c0_i32_0, %c0_i32_1 : i32, i32, i32
  }
  func.func @transform_5(%arg0: i32) -> (i32, i32, i32) {
    %c0_i32 = arith.constant 0 : i32
    %c0_i32_0 = arith.constant 0 : i32
    %c0_i32_1 = arith.constant 0 : i32
    %c0_i32_2 = arith.constant 0 : i32
    return %c0_i32, %c0_i32_0, %c0_i32_1 : i32, i32, i32
  }
  func.func @transform_6(%arg0: i32) -> (i32, i32) {
    %c0_i32 = arith.constant 0 : i32
    %c0_i32_0 = arith.constant 0 : i32
    %c0_i32_1 = arith.constant 0 : i32
    return %c0_i32, %c0_i32_0 : i32, i32
  }
  func.func @transform_7(%arg0: i32) -> (i32, i32) {
    %c0_i32 = arith.constant 0 : i32
    %c0_i32_0 = arith.constant 0 : i32
    %c0_i32_1 = arith.constant 0 : i32
    return %c0_i32, %c0_i32_0 : i32, i32
  }
  func.func @transform_8(%arg0: i32) -> (i32, i32) {
    %c0_i32 = arith.constant 0 : i32
    %c0_i32_0 = arith.constant 0 : i32
    return %arg0, %c0_i32 : i32, i32
  }
}

module attributes {stable_mosaic.version = 11 : i64} {
  func.func @_mingru_mlp_kernel(%arg0: i32, %arg1: memref<2x4xf32, #tpu.memory_space<vmem>>, %arg2: memref<2x1xi32, #tpu.memory_space<vmem>>, %arg3: memref<4x256xbf16, #tpu.memory_space<vmem>>, %arg4: memref<16x256xbf16, #tpu.memory_space<vmem>>, %arg5: memref<1x128x256xbf16, #tpu.memory_space<vmem>>, %arg6: memref<1x1x256xf32, #tpu.memory_space<vmem>>, %arg7: memref<128x4xbf16, #tpu.memory_space<vmem>>, %arg8: memref<1x4xf32, #tpu.memory_space<vmem>>, %arg9: memref<2x4xf32, #tpu.memory_space<vmem>>) attributes {dimension_semantics = [#tpu.dimension_semantics<parallel>], iteration_bounds = array<i64: 1>, scalar_prefetch = 0 : i64, scratch_operands = 0 : i64, tpu.core_type = #tpu.core_type<tc>, window_params = [{transform_indices = @transform_0, window_bounds = array<i64: 2, 4>}, {transform_indices = @transform_1, window_bounds = array<i64: 2, 1>}, {pipeline_mode = #tpu.pipeline_mode<synchronous>, transform_indices = @transform_2, window_bounds = array<i64: 4, 256>}, {pipeline_mode = #tpu.pipeline_mode<synchronous>, transform_indices = @transform_3, window_bounds = array<i64: 16, 256>}, {pipeline_mode = #tpu.pipeline_mode<synchronous>, transform_indices = @transform_4, window_bounds = array<i64: 1, 128, 256>}, {pipeline_mode = #tpu.pipeline_mode<synchronous>, transform_indices = @transform_5, window_bounds = array<i64: 1, 1, 256>}, {pipeline_mode = #tpu.pipeline_mode<synchronous>, transform_indices = @transform_6, window_bounds = array<i64: 128, 4>}, {pipeline_mode = #tpu.pipeline_mode<synchronous>, transform_indices = @transform_7, window_bounds = array<i64: 1, 4>}, {transform_indices = @transform_8, window_bounds = array<i64: 2, 4>}]} {
    %c0 = arith.constant 0 : index
    %c0_0 = arith.constant 0 : index
    %0 = vector.load %arg1[%c0, %c0_0] : memref<2x4xf32, #tpu.memory_space<vmem>>, vector<2x4xf32>
    %1 = arith.truncf %0 : vector<2x4xf32> to vector<2x4xbf16>
    %c0_1 = arith.constant 0 : index
    %c0_2 = arith.constant 0 : index
    %2 = vector.load %arg2[%c0_1, %c0_2] : memref<2x1xi32, #tpu.memory_space<vmem>>, vector<2x1xi32>
    %3 = tpu.iota {dimensions = array<i32: 1>} : vector<2x16xi32>
    %4 = vector.broadcast %2 : vector<2x1xi32> to vector<2x16xi32>
    %5 = arith.cmpi eq, %3, %4 : vector<2x16xi32>
    %6 = arith.extui %5 : vector<2x16xi1> to vector<2x16xi32>
    %7 = arith.sitofp %6 : vector<2x16xi32> to vector<2x16xf32>
    %8 = arith.truncf %7 : vector<2x16xf32> to vector<2x16xbf16>
    %c0_3 = arith.constant 0 : index
    %c0_4 = arith.constant 0 : index
    %9 = vector.load %arg3[%c0_3, %c0_4] : memref<4x256xbf16, #tpu.memory_space<vmem>>, vector<4x256xbf16>
    %cst = arith.constant dense<0.000000e+00> : vector<2x256xf32>
    %10 = tpu.matmul %1, %9, %cst {dimension_numbers = #tpu.dot_dimension_numbers<[1], [0], [0], [1], [0, 0, 1, 1], [], []>} : vector<2x4xbf16>, vector<4x256xbf16>, vector<2x256xf32> -> vector<2x256xf32>
    %c0_5 = arith.constant 0 : index
    %c0_6 = arith.constant 0 : index
    %11 = vector.load %arg4[%c0_5, %c0_6] : memref<16x256xbf16, #tpu.memory_space<vmem>>, vector<16x256xbf16>
    %cst_7 = arith.constant dense<0.000000e+00> : vector<2x256xf32>
    %12 = tpu.matmul %8, %11, %cst_7 {dimension_numbers = #tpu.dot_dimension_numbers<[1], [0], [0], [1], [0, 0, 1, 1], [], []>} : vector<2x16xbf16>, vector<16x256xbf16>, vector<2x256xf32> -> vector<2x256xf32>
    %13 = arith.addf %10, %12 : vector<2x256xf32>
    %14 = vector.extract_strided_slice %13 {offsets = [0, 0], sizes = [2, 128], strides = [1, 1]} : vector<2x256xf32> to vector<2x128xf32>
    %15 = arith.negf %14 : vector<2x128xf32>
    %16 = math.exp %15 : vector<2x128xf32>
    %cst_8 = arith.constant 1.000000e+00 : f32
    %17 = vector.broadcast %cst_8 : f32 to vector<2x128xf32>
    %18 = arith.addf %17, %16 : vector<2x128xf32>
    %19 = arith.divf %17, %18 : vector<2x128xf32>
    %20 = vector.extract_strided_slice %13 {offsets = [0, 128], sizes = [2, 128], strides = [1, 1]} : vector<2x256xf32> to vector<2x128xf32>
    %21 = arith.mulf %19, %20 : vector<2x128xf32>
    %22 = arith.truncf %21 : vector<2x128xf32> to vector<2x128xbf16>
    %c0_9 = arith.constant 0 : index
    %c0_10 = arith.constant 0 : index
    %c0_11 = arith.constant 0 : index
    %23 = vector.load %arg5[%c0_9, %c0_10, %c0_11] : memref<1x128x256xbf16, #tpu.memory_space<vmem>>, vector<1x128x256xbf16>
    %24 = vector.shape_cast %23 : vector<1x128x256xbf16> to vector<128x256xbf16>
    %cst_12 = arith.constant dense<0.000000e+00> : vector<2x256xf32>
    %25 = tpu.matmul %22, %24, %cst_12 {dimension_numbers = #tpu.dot_dimension_numbers<[1], [0], [0], [1], [0, 0, 1, 1], [], []>} : vector<2x128xbf16>, vector<128x256xbf16>, vector<2x256xf32> -> vector<2x256xf32>
    %c0_13 = arith.constant 0 : index
    %c0_14 = arith.constant 0 : index
    %c0_15 = arith.constant 0 : index
    %26 = vector.load %arg6[%c0_13, %c0_14, %c0_15] : memref<1x1x256xf32, #tpu.memory_space<vmem>>, vector<1x1x256xf32>
    %27 = vector.shape_cast %26 : vector<1x1x256xf32> to vector<1x256xf32>
    %28 = vector.broadcast %27 : vector<1x256xf32> to vector<2x256xf32>
    %29 = arith.addf %25, %28 : vector<2x256xf32>
    %30 = vector.extract_strided_slice %29 {offsets = [0, 0], sizes = [2, 128], strides = [1, 1]} : vector<2x256xf32> to vector<2x128xf32>
    %31 = arith.negf %30 : vector<2x128xf32>
    %32 = math.exp %31 : vector<2x128xf32>
    %cst_16 = arith.constant 1.000000e+00 : f32
    %33 = vector.broadcast %cst_16 : f32 to vector<2x128xf32>
    %34 = arith.addf %33, %32 : vector<2x128xf32>
    %35 = arith.divf %33, %34 : vector<2x128xf32>
    %36 = vector.extract_strided_slice %29 {offsets = [0, 128], sizes = [2, 128], strides = [1, 1]} : vector<2x256xf32> to vector<2x128xf32>
    %37 = arith.mulf %35, %36 : vector<2x128xf32>
    %38 = arith.truncf %37 : vector<2x128xf32> to vector<2x128xbf16>
    %c0_17 = arith.constant 0 : index
    %c0_18 = arith.constant 0 : index
    %39 = vector.load %arg7[%c0_17, %c0_18] : memref<128x4xbf16, #tpu.memory_space<vmem>>, vector<128x4xbf16>
    %cst_19 = arith.constant dense<0.000000e+00> : vector<2x4xf32>
    %40 = tpu.matmul %38, %39, %cst_19 {dimension_numbers = #tpu.dot_dimension_numbers<[1], [0], [0], [1], [0, 0, 1, 1], [], []>} : vector<2x128xbf16>, vector<128x4xbf16>, vector<2x4xf32> -> vector<2x4xf32>
    %c0_20 = arith.constant 0 : index
    %c0_21 = arith.constant 0 : index
    %41 = vector.load %arg8[%c0_20, %c0_21] : memref<1x4xf32, #tpu.memory_space<vmem>>, vector<1x4xf32>
    %42 = vector.broadcast %41 : vector<1x4xf32> to vector<2x4xf32>
    %43 = arith.addf %40, %42 : vector<2x4xf32>
    %c0_22 = arith.constant 0 : index
    %c0_23 = arith.constant 0 : index
    %44 = vector.load %arg9[%c0_22, %c0_23] : memref<2x4xf32, #tpu.memory_space<vmem>>, vector<2x4xf32>
    tpu.vector_store %arg9[%c0_22, %c0_23], %43 {strides = array<i32>} : memref<2x4xf32, #tpu.memory_space<vmem>>, vector<2x4xf32>,
    return
  }
  func.func @transform_0(%arg0: i32) -> (i32, i32) {
    %c0_i32 = arith.constant 0 : i32
    %c0_i32_0 = arith.constant 0 : i32
    return %arg0, %c0_i32 : i32, i32
  }
  func.func @transform_1(%arg0: i32) -> (i32, i32) {
    %c0_i32 = arith.constant 0 : i32
    %c0_i32_0 = arith.constant 0 : i32
    return %arg0, %c0_i32 : i32, i32
  }
  func.func @transform_2(%arg0: i32) -> (i32, i32) {
    %c0_i32 = arith.constant 0 : i32
    %c0_i32_0 = arith.constant 0 : i32
    %c0_i32_1 = arith.constant 0 : i32
    return %c0_i32, %c0_i32_0 : i32, i32
  }
  func.func @transform_3(%arg0: i32) -> (i32, i32) {
    %c0_i32 = arith.constant 0 : i32
    %c0_i32_0 = arith.constant 0 : i32
    %c0_i32_1 = arith.constant 0 : i32
    return %c0_i32, %c0_i32_0 : i32, i32
  }
  func.func @transform_4(%arg0: i32) -> (i32, i32, i32) {
    %c0_i32 = arith.constant 0 : i32
    %c0_i32_0 = arith.constant 0 : i32
    %c0_i32_1 = arith.constant 0 : i32
    %c0_i32_2 = arith.constant 0 : i32
    return %c0_i32, %c0_i32_0, %c0_i32_1 : i32, i32, i32
  }
  func.func @transform_5(%arg0: i32) -> (i32, i32, i32) {
    %c0_i32 = arith.constant 0 : i32
    %c0_i32_0 = arith.constant 0 : i32
    %c0_i32_1 = arith.constant 0 : i32
    %c0_i32_2 = arith.constant 0 : i32
    return %c0_i32, %c0_i32_0, %c0_i32_1 : i32, i32, i32
  }
  func.func @transform_6(%arg0: i32) -> (i32, i32) {
    %c0_i32 = arith.constant 0 : i32
    %c0_i32_0 = arith.constant 0 : i32
    %c0_i32_1 = arith.constant 0 : i32
    return %c0_i32, %c0_i32_0 : i32, i32
  }
  func.func @transform_7(%arg0: i32) -> (i32, i32) {
    %c0_i32 = arith.constant 0 : i32
    %c0_i32_0 = arith.constant 0 : i32
    %c0_i32_1 = arith.constant 0 : i32
    return %c0_i32, %c0_i32_0 : i32, i32
  }
  func.func @transform_8(%arg0: i32) -> (i32, i32) {
    %c0_i32 = arith.constant 0 : i32
    %c0_i32_0 = arith.constant 0 : i32
    return %arg0, %c0_i32 : i32, i32
  }
}

</mosaic_0001>

<bundles_post_ra>
// kernel: tpu_custom_call.1
= control target key start
LH: loop header
LB: loop body
LE: loop exit
PB: predicated region body
PF: predicated region fallthrough
CT: control target
= control target key end

     0   :  { %13 = vsyncpa [#allocation3], 0  ;;  %s766_s0 = inlined_call_operand.vmem [shape: f32[2,4], index: 0, kind: input, shape index: {}]   ;;  %s767_s1 = inlined_call_operand.vmem [shape: s32[2,1], index: 1, kind: input, shape index: {}]   ;;  %s768_s2 = inlined_call_operand.vmem [shape: bf16[4,256], index: 2, kind: input, shape index: {}]   ;;  %s769_s3 = inlined_call_operand.vmem [shape: bf16[16,256], index: 3, kind: input, shape index: {}]   ;;  %s770_s4 = inlined_call_operand.hbm [shape: bf16[1,128,256], index: 4, kind: input, shape index: {}]   ;;  %s771_s5 = inlined_call_operand.vmem [shape: f32[1,1,256], index: 5, kind: input, shape index: {}]   ;;  %s772_s6 = inlined_call_operand.vmem [shape: bf16[128,4], index: 6, kind: input, shape index: {}]   ;;  %s773_s7 = inlined_call_operand.vmem [shape: f32[1,4], index: 7, kind: input, shape index: {}]   ;;  %s774_s8 = inlined_call_operand.hbm [shape: f32[2,4], index: 8, kind: output, shape index: {}]  }
   0x1   :  { %14 = vsyncpa [#allocation4], 0  ;;  %s633_s27 = smov [#allocation2]   ;;  %s585_s9 = scalar_lea.hbm %s770_s4, 2048 }
   0x2   :  { %s28_s28 = sshll.u32 %s633_s27, 4  ;;  %p586_p0 = scmp.ne.s32.totalorder %s770_s4, %s585_s9  ;;  %s29_s28 = int_to_ptr.vmem [resolvable:$true] %s28_s28 }
   0x3   :  { %p589_p1 = scmp.lt.u32.totalorder %s585_s9, %s770_s4 }
   0x5   :  { %p591_p2 = pnand %p589_p1, %p586_p0 }
   0x7   :  { %594 = shalt.err (!%p591_p2)
}
   0x8   :  { %s595_s14 = scalar_lea.vmem %s29_s28, 2048  ;;  %p600_p4 = scmp.lt.s32.totalorder %s29_s28, %s29_s28 }
   0x9   :  { %p596_p3 = scmp.ne.s32.totalorder %s29_s28, %s595_s14  ;;  %p601_p5 = scmp.lt.s32.totalorder %s595_s14, %s595_s14 }
   0xb   :  { %p602_p6 = por %p601_p5, %p600_p4 }
   0xd   :  { %p603_p7 = pnand %p602_p6, %p596_p3 }
   0xf   :  { %606 = shalt.err (!%p603_p7)
}
  0x10   :  { %s634_s15 = smov 128   ;;  %s635_s16 = smov 8  }
  0x11   :  { %34 = dma.hbm_to_vmem [thread:$0]  %s770_s4, 2048, %s29_s28, [#allocation3], %s634_s15, %s634_s15, %s635_s16  }
  0x12   :  { %629 = dma.done.wait [#allocation3], 2048  }
  0x13   :  { %630 = vsyncadd [#allocation3], 4294965248  ;;  %v636_v0 = vmov 0   ;;  %vm128_vm0 = vcmask 1041408   ;;  %v47_v1 = vld [vmem:[%s767_s1] sm:$0x3]  ;;  %v48_v10 = vlaneseq }
  0x14   :  { %541 = vset.pattern.permute.xlu0 %v636_v0  ;;  %167 = vmatprep.mubr.bf16.mxu0 %v636_v0  ;;  %v473_v2 = vld.sshfl [vmem:[%s768_s2] sm:$0x33 pattern:$0x76325410]  ;;  %v542_v5 = vld [vmem:[%s769_s3 + $0x4] ss:$8 sps:$4 sm:$0xff]  }
  0x15   :  { %106 = vmatprep.mubr.bf16.mxu1 %v636_v0  ;;  %51 = vperm.xlu0 %541, %v47_v1   ;;  %v123_v3 = vcombine.high %v473_v2, %v473_v2  ;;  %v130_v4 = vsel %vm128_vm0, %v473_v2, 0  ;;  %v544_v6 = vld [vmem:[%s769_s3] ss:$8 sps:$4 sm:$0xff]   ;;  %vm124_vm1 = vcmask 31744   ;;  %v637_v9 = vmov 0.0   ;;  %v571_v49 = vld [vmem:[%s772_s6 + $0x10] sm:$0xff]  }
  0x16   :  { %v45_v7 = vld [vmem:[%s766_s0] sm:$0x3]  ;;  %74 = vmatprep.subr.bf16.mxu1 %v542_v5  ;;  %v49_v11 = vand.u32 127, %v48_v10  ;;  %vm70_vm3 = vcmask 130048   ;;  %v547_v15 = vld [vmem:[#allocation2 + $0x4] ss:$8 sps:$4 sm:$0xff]  }
  0x17   :  { %474 = vmatprep.subr.msk.bf16.mxu0 %vm128_vm0, %v123_v3  ;;  %v46_v8 = vpack.c.bf16 %v45_v7, %v45_v7  ;;  %75 = vmatpush1.bf16.msra.mxu1 %v544_v6  ;;  %v545_v16 = vld [vmem:[#allocation2] ss:$8 sps:$4 sm:$0xff]   ;;  %v550_v19 = vld [vmem:[#allocation2 + $0x14] ss:$8 sps:$4 sm:$0xff]   ;;  %v548_v21 = vld [vmem:[#allocation2 + $0x10] ss:$8 sps:$4 sm:$0xff]  }
  0x18   :  { %136 = vmatpush1.bf16.msra.mxu0 %v130_v4  ;;  %292 = vmatprep.subr.bf16.mxu1 %v547_v15  ;;  %v553_v23 = vld [vmem:[#allocation2 + $0x24] ss:$8 sps:$4 sm:$0xff]   ;;  %v551_v24 = vld [vmem:[#allocation2 + $0x20] ss:$8 sps:$4 sm:$0xff]   ;;  %v556_v25 = vld [vmem:[#allocation2 + $0x34] ss:$8 sps:$4 sm:$0xff]  }
  0x19   :  { %512 = vmatprep.subr.bf16.mxu0 %v637_v9  ;;  %v554_v26 = vld [vmem:[#allocation2 + $0x30] ss:$8 sps:$4 sm:$0xff]   ;;  %v559_v27 = vld [vmem:[#allocation2 + $0x44] ss:$8 sps:$4 sm:$0xff]   ;;  %v557_v28 = vld [vmem:[#allocation2 + $0x40] ss:$8 sps:$4 sm:$0xff]  }
  0x1a   :  { %v562_v29 = vld [vmem:[#allocation2 + $0x54] ss:$8 sps:$4 sm:$0xff]   ;;  %v560_v30 = vld [vmem:[#allocation2 + $0x50] ss:$8 sps:$4 sm:$0xff]   ;;  %v565_v31 = vld [vmem:[#allocation2 + $0x64] ss:$8 sps:$4 sm:$0xff]  }
  0x1b   :  { %475 = vmatmul.mubr.msk.bf16.vlgmr.msra.gmra.mrb[0].mxu0 %vm124_vm1, %v46_v8  ;;  %v563_v32 = vld [vmem:[#allocation2 + $0x60] ss:$8 sps:$4 sm:$0xff]   ;;  %v568_v33 = vld [vmem:[#allocation2 + $0x74] ss:$8 sps:$4 sm:$0xff]   ;;  %v566_v34 = vld [vmem:[#allocation2 + $0x70] ss:$8 sps:$4 sm:$0xff]  }
  0x1c   :  { %v569_v47 = vld [vmem:[%s772_s6] sm:$0xff]   ;;  %v570_v48 = vld [vmem:[%s772_s6 + $0x8] sm:$0xff]   ;;  %v572_v50 = vld [vmem:[%s772_s6 + $0x18] sm:$0xff]   ;;  %vm638_vm4 = vmmov 0   ;;  %v203_v55 = vshrl.u32 %v48_v10, 7  ;;  %s639_s20 = smov [#allocation5]  }
  0x1d   :  { %513 = vmatpush3.bf16.msra.mxu0 %v569_v47  ;;  %v573_v51 = vld [vmem:[%s772_s6 + $0x20] sm:$0xff]   ;;  %v574_v52 = vld [vmem:[%s772_s6 + $0x28] sm:$0xff]   ;;  %v575_v53 = vld [vmem:[%s772_s6 + $0x30] sm:$0xff]   ;;  %528 = vmatprep.mubr.msk.bf16.mxu0 %vm638_vm4, %v637_v9  ;;  %s460_s21 = sshll.u32 %s639_s20, 4  ;;  %vm452_vm5 = vcmask 25600   ;;  %s461_s21 = int_to_ptr.vmem [resolvable:$true] %s460_s21 }
  0x1e   :  { %514 = vmatprep.subr.bf16.mxu0 %v637_v9  ;;  %v576_v54 = vld [vmem:[%s772_s6 + $0x38] sm:$0xff]   ;;  %v204_v56 = vsub.s32 0, %v203_v55  ;;  %v200_v57 = vld [vmem:[%s771_s5] sm:$0x3]  ;;  %v208_v3 = vsub.s32 1, %v203_v55  ;;  %s607_s22 = scalar_lea.vmem %s461_s21, 32  ;;  %p612_p9 = scmp.lt.s32.totalorder %s461_s21, %s461_s21 }
  0x1f   :  { %p608_p8 = scmp.ne.s32.totalorder %s461_s21, %s607_s22  ;;  %p613_p10 = scmp.lt.s32.totalorder %s607_s22, %s607_s22 }
  0x20   :  { %v205_v58 = vrot.slane %v200_v57, %v204_v56  ;;  %v209_v4 = vrot.slane %v200_v57, %v208_v3 }
  0x21   :  { %515 = vmatpush3.bf16.msra.mxu0 %v570_v48  ;;  %p614_p11 = por %p613_p10, %p612_p9 }
  0x22   :  { %516 = vmatprep.subr.bf16.mxu0 %v637_v9 }
  0x23   :  { %p615_p12 = pnand %p614_p11, %p608_p8 }
  0x25   :  { %517 = vmatpush3.bf16.msra.mxu0 %v571_v49 }
  0x26   :  { %518 = vmatprep.subr.bf16.mxu0 %v637_v9 }
  0x29   :  { %519 = vmatpush3.bf16.msra.mxu0 %v572_v50 }
  0x2a   :  { %520 = vmatprep.subr.bf16.mxu0 %v637_v9 }
  0x2d   :  { %521 = vmatpush3.bf16.msra.mxu0 %v573_v51 }
  0x2e   :  { %522 = vmatprep.subr.bf16.mxu0 %v637_v9 }
  0x31   :  { %523 = vmatpush3.bf16.msra.mxu0 %v574_v52 }
  0x32   :  { %524 = vmatprep.subr.bf16.mxu0 %v637_v9 }
  0x35   :  { %525 = vmatpush3.bf16.msra.mxu0 %v575_v53 }
  0x36   :  { %526 = vmatprep.subr.bf16.mxu0 %v637_v9 }
  0x39   :  { %527 = vmatpush3.bf16.msra.mxu0 %v576_v54 }
  0x94   :  { %v52_v12 = vpop.permute.xlu0 %51 }
  0x95   :  { %vm53_vm2 = vcmp.eq.s32.totalorder %v49_v11, %v52_v12 }
  0x96   :  { %v469_v13 = vsel %vm53_vm2, 1.0, %v637_v9  ;;  %v494_v9 = vld [vmem:[%s773_s7] ss:$0 sm:$0xff] }
  0x97   :  { %v56_v14 = vpack.c.bf16 %v469_v13, %v469_v13 }
  0x99   :  { %472 = vmatmul.mubr.msk.bf16.vlgmr.msra.gmra.mrb[0].mxu1 %vm70_vm3, %v56_v14 }
  0x9a   :  { %324 = vmatprep.mubr.bf16.mxu1 %v636_v0  ;;  %293 = vmatpush1.bf16.msra.mxu1 %v545_v16 }
  0x9b   :  { %294 = vmatprep.subr.bf16.mxu1 %v550_v19 }
  0x9e   :  { %295 = vmatpush1.bf16.msra.mxu1 %v548_v21 }
  0x9f   :  { %296 = vmatprep.subr.bf16.mxu1 %v553_v23 }
  0xa2   :  { %297 = vmatpush1.bf16.msra.mxu1 %v551_v24 }
  0xa3   :  { %298 = vmatprep.subr.bf16.mxu1 %v556_v25 }
  0xa6   :  { %299 = vmatpush1.bf16.msra.mxu1 %v554_v26 }
  0xa7   :  { %300 = vmatprep.subr.bf16.mxu1 %v559_v27 }
  0xaa   :  { %301 = vmatpush1.bf16.msra.mxu1 %v557_v28 }
  0xab   :  { %302 = vmatprep.subr.bf16.mxu1 %v562_v29 }
  0xae   :  { %303 = vmatpush1.bf16.msra.mxu1 %v560_v30 }
  0xaf   :  { %304 = vmatprep.subr.bf16.mxu1 %v565_v31 }
  0xb2   :  { %305 = vmatpush1.bf16.msra.mxu1 %v563_v32 }
  0xb3   :  { %306 = vmatprep.subr.bf16.mxu1 %v568_v33 }
  0xb6   :  { %307 = vmatpush1.bf16.msra.mxu1 %v566_v34 }
  0xee   :  { %v169_v17 = vpop.f32.mrb[0].mxu0 }
  0xef   :  { %v171_v18 = vpop.f32.mrb[1].mxu0 }
  0xf0   :  { %v173_v20 = vpop.f32.mrb[2].mxu0 }
  0xf1   :  { %v174_v22 = vpop.f32.mrb[3].mxu0 }
 0x16c   :  { %v108_v35 = vpop.f32.mrb[0].mxu1 }
 0x16d   :  { %v170_v36 = vadd.f32 %v169_v17, %v108_v35  ;;  %v110_v37 = vpop.f32.mrb[1].mxu1 }
 0x16e   :  { %v172_v38 = vadd.f32 %v171_v18, %v110_v37  ;;  %v112_v39 = vpop.f32.mrb[2].mxu1 }
 0x16f   :  { %v476_v40 = vmul.f32 -1.442695, %v170_v36  ;;  %v113_v41 = vpop.f32.mrb[3].mxu1 }
 0x171   :  { %577 = vpow2.f32 %v476_v40 }
 0x17b   :  { %v578_v42 = vpop.eup %577 }
 0x17c   :  { %v179_v43 = vadd.f32 1.0, %v578_v42 }
 0x17e   :  { %579 = vrcp.f32 %v179_v43 }
 0x188   :  { %v580_v44 = vpop.eup %579 }
 0x189   :  { %v182_v45 = vmul.f32 %v580_v44, %v172_v38 }
 0x18b   :  { %v183_v46 = vpack.c.bf16 %v182_v45, %v182_v45 }
 0x18d   :  { %325 = vmatmul.mubr.bf16.vlgmr.msra.gmra.mrb[4].mxu1 %v183_v46 }
 0x260   :  { %v326_v59 = vpop.f32.mrb[4].mxu1 }
 0x261   :  { %v327_v60 = vadd.f32 %v326_v59, %v205_v58  ;;  %v328_v61 = vpop.f32.mrb[5].mxu1 }
 0x262   :  { %v330_v62 = vpop.f32.mrb[6].mxu1  ;;  %v329_v5 = vadd.f32 %v328_v61, %v209_v4 }
 0x263   :  { %v493_v63 = vmul.f32 -1.442695, %v327_v60  ;;  %v331_v0 = vpop.f32.mrb[7].mxu1 }
 0x265   :  { %581 = vpow2.f32 %v493_v63 }
 0x26f   :  { %v582_v1 = vpop.eup %581 }
 0x270   :  { %v336_v2 = vadd.f32 1.0, %v582_v1 }
 0x272   :  { %583 = vrcp.f32 %v336_v2 }
 0x27c   :  { %v584_v6 = vpop.eup %583 }
 0x27d   :  { %v339_v7 = vmul.f32 %v584_v6, %v329_v5 }
 0x27f   :  { %v340_v8 = vpack.c.bf16 %v339_v7, %v339_v7 }
 0x281   :  { %529 = vmatmul.mubr.bf16.vlgmr.msra.gmra.mrb[4].mxu0 %v340_v8 }
 0x354   :  { %v446_v10 = vpop.f32.mrb[4].mxu0 }
 0x355   :  { %v447_v11 = vadd.f32 %v494_v9, %v446_v10  ;;  %v530_v12 = vpop.f32.mrb[5].mxu0 }
 0x356   :  { %v449_v13 = vpop.f32.mrb[6].mxu0 }
 0x357   :  { %v531_v14 = vpop.f32.mrb[7].mxu0  ;;  %453 = vst.msk [vmem:[#allocation5] sm:$0x3] %vm452_vm5, %v447_v11 }
 0x358   :  { %618 = shalt.err (!%p615_p12)
}
 0x359   :  { %s619_s7 = scalar_lea.hbm %s774_s8, 32 }
 0x35a   :  { %p620_p13 = scmp.ne.s32.totalorder %s774_s8, %s619_s7  ;;  %p623_p0 = scmp.lt.u32.totalorder %s619_s7, %s774_s8 }
 0x35c   :  { %p625_p1 = pnand %p623_p0, %p620_p13 }
 0x35e   :  { %628 = shalt.err (!%p625_p1)
}
 0x35f   :  { %463 = dma.vmem_to_hbm [thread:$0]  %s461_s21, 32, %s774_s8, [#allocation4]  }
 0x360   :  { %631 = dma.done.wait [#allocation4], 32  }
 0x361   :  { %632 = vsyncadd [#allocation4], 4294967264 }
 0x362   :  { %467 = vsyncpa [#allocation3], 1 }
 0x363   :  { %468 = vsyncpa [#allocation4], 1 }

// kernel: tpu_custom_call.1
= control target key start
LH: loop header
LB: loop body
LE: loop exit
PB: predicated region body
PF: predicated region fallthrough
CT: control target
= control target key end

     0   :  { %13 = vsyncpa [#allocation3], 0  ;;  %s766_s0 = inlined_call_operand.vmem [shape: f32[2,4], index: 0, kind: input, shape index: {}]   ;;  %s767_s1 = inlined_call_operand.vmem [shape: s32[2,1], index: 1, kind: input, shape index: {}]   ;;  %s768_s2 = inlined_call_operand.vmem [shape: bf16[4,256], index: 2, kind: input, shape index: {}]   ;;  %s769_s3 = inlined_call_operand.vmem [shape: bf16[16,256], index: 3, kind: input, shape index: {}]   ;;  %s770_s4 = inlined_call_operand.hbm [shape: bf16[1,128,256], index: 4, kind: input, shape index: {}]   ;;  %s771_s5 = inlined_call_operand.vmem [shape: f32[1,1,256], index: 5, kind: input, shape index: {}]   ;;  %s772_s6 = inlined_call_operand.vmem [shape: bf16[128,4], index: 6, kind: input, shape index: {}]   ;;  %s773_s7 = inlined_call_operand.vmem [shape: f32[1,4], index: 7, kind: input, shape index: {}]   ;;  %s774_s8 = inlined_call_operand.hbm [shape: f32[2,4], index: 8, kind: output, shape index: {}]  }
   0x1   :  { %14 = vsyncpa [#allocation4], 0  ;;  %s633_s27 = smov [#allocation2]   ;;  %s585_s9 = scalar_lea.hbm %s770_s4, 2048 }
   0x2   :  { %s28_s28 = sshll.u32 %s633_s27, 4  ;;  %p586_p0 = scmp.ne.s32.totalorder %s770_s4, %s585_s9  ;;  %s29_s28 = int_to_ptr.vmem [resolvable:$true] %s28_s28 }
   0x3   :  { %p589_p1 = scmp.lt.u32.totalorder %s585_s9, %s770_s4 }
   0x5   :  { %p591_p2 = pnand %p589_p1, %p586_p0 }
   0x7   :  { %594 = shalt.err (!%p591_p2)
}
   0x8   :  { %s595_s14 = scalar_lea.vmem %s29_s28, 2048  ;;  %p600_p4 = scmp.lt.s32.totalorder %s29_s28, %s29_s28 }
   0x9   :  { %p596_p3 = scmp.ne.s32.totalorder %s29_s28, %s595_s14  ;;  %p601_p5 = scmp.lt.s32.totalorder %s595_s14, %s595_s14 }
   0xb   :  { %p602_p6 = por %p601_p5, %p600_p4 }
   0xd   :  { %p603_p7 = pnand %p602_p6, %p596_p3 }
   0xf   :  { %606 = shalt.err (!%p603_p7)
}
  0x10   :  { %s634_s15 = smov 128   ;;  %s635_s16 = smov 8  }
  0x11   :  { %34 = dma.hbm_to_vmem [thread:$0]  %s770_s4, 2048, %s29_s28, [#allocation3], %s634_s15, %s634_s15, %s635_s16  }
  0x12   :  { %629 = dma.done.wait [#allocation3], 2048  }
  0x13   :  { %630 = vsyncadd [#allocation3], 4294965248  ;;  %v636_v0 = vmov 0   ;;  %vm128_vm0 = vcmask 1041408   ;;  %v47_v1 = vld [vmem:[%s767_s1] sm:$0x3]  ;;  %v48_v10 = vlaneseq }
  0x14   :  { %541 = vset.pattern.permute.xlu0 %v636_v0  ;;  %167 = vmatprep.mubr.bf16.mxu0 %v636_v0  ;;  %v473_v2 = vld.sshfl [vmem:[%s768_s2] sm:$0x33 pattern:$0x76325410]  ;;  %v542_v5 = vld [vmem:[%s769_s3 + $0x4] ss:$8 sps:$4 sm:$0xff]  }
  0x15   :  { %106 = vmatprep.mubr.bf16.mxu1 %v636_v0  ;;  %51 = vperm.xlu0 %541, %v47_v1   ;;  %v123_v3 = vcombine.high %v473_v2, %v473_v2  ;;  %v130_v4 = vsel %vm128_vm0, %v473_v2, 0  ;;  %v544_v6 = vld [vmem:[%s769_s3] ss:$8 sps:$4 sm:$0xff]   ;;  %vm124_vm1 = vcmask 31744   ;;  %v637_v9 = vmov 0.0   ;;  %v571_v49 = vld [vmem:[%s772_s6 + $0x10] sm:$0xff]  }
  0x16   :  { %v45_v7 = vld [vmem:[%s766_s0] sm:$0x3]  ;;  %74 = vmatprep.subr.bf16.mxu1 %v542_v5  ;;  %v49_v11 = vand.u32 127, %v48_v10  ;;  %vm70_vm3 = vcmask 130048   ;;  %v547_v15 = vld [vmem:[#allocation2 + $0x4] ss:$8 sps:$4 sm:$0xff]  }
  0x17   :  { %474 = vmatprep.subr.msk.bf16.mxu0 %vm128_vm0, %v123_v3  ;;  %v46_v8 = vpack.c.bf16 %v45_v7, %v45_v7  ;;  %75 = vmatpush1.bf16.msra.mxu1 %v544_v6  ;;  %v545_v16 = vld [vmem:[#allocation2] ss:$8 sps:$4 sm:$0xff]   ;;  %v550_v19 = vld [vmem:[#allocation2 + $0x14] ss:$8 sps:$4 sm:$0xff]   ;;  %v548_v21 = vld [vmem:[#allocation2 + $0x10] ss:$8 sps:$4 sm:$0xff]  }
  0x18   :  { %136 = vmatpush1.bf16.msra.mxu0 %v130_v4  ;;  %292 = vmatprep.subr.bf16.mxu1 %v547_v15  ;;  %v553_v23 = vld [vmem:[#allocation2 + $0x24] ss:$8 sps:$4 sm:$0xff]   ;;  %v551_v24 = vld [vmem:[#allocation2 + $0x20] ss:$8 sps:$4 sm:$0xff]   ;;  %v556_v25 = vld [vmem:[#allocation2 + $0x34] ss:$8 sps:$4 sm:$0xff]  }
  0x19   :  { %512 = vmatprep.subr.bf16.mxu0 %v637_v9  ;;  %v554_v26 = vld [vmem:[#allocation2 + $0x30] ss:$8 sps:$4 sm:$0xff]   ;;  %v559_v27 = vld [vmem:[#allocation2 + $0x44] ss:$8 sps:$4 sm:$0xff]   ;;  %v557_v28 = vld [vmem:[#allocation2 + $0x40] ss:$8 sps:$4 sm:$0xff]  }
  0x1a   :  { %v562_v29 = vld [vmem:[#allocation2 + $0x54] ss:$8 sps:$4 sm:$0xff]   ;;  %v560_v30 = vld [vmem:[#allocation2 + $0x50] ss:$8 sps:$4 sm:$0xff]   ;;  %v565_v31 = vld [vmem:[#allocation2 + $0x64] ss:$8 sps:$4 sm:$0xff]  }
  0x1b   :  { %475 = vmatmul.mubr.msk.bf16.vlgmr.msra.gmra.mrb[0].mxu0 %vm124_vm1, %v46_v8  ;;  %v563_v32 = vld [vmem:[#allocation2 + $0x60] ss:$8 sps:$4 sm:$0xff]   ;;  %v568_v33 = vld [vmem:[#allocation2 + $0x74] ss:$8 sps:$4 sm:$0xff]   ;;  %v566_v34 = vld [vmem:[#allocation2 + $0x70] ss:$8 sps:$4 sm:$0xff]  }
  0x1c   :  { %v569_v47 = vld [vmem:[%s772_s6] sm:$0xff]   ;;  %v570_v48 = vld [vmem:[%s772_s6 + $0x8] sm:$0xff]   ;;  %v572_v50 = vld [vmem:[%s772_s6 + $0x18] sm:$0xff]   ;;  %vm638_vm4 = vmmov 0   ;;  %v203_v55 = vshrl.u32 %v48_v10, 7  ;;  %s639_s20 = smov [#allocation5]  }
  0x1d   :  { %513 = vmatpush3.bf16.msra.mxu0 %v569_v47  ;;  %v573_v51 = vld [vmem:[%s772_s6 + $0x20] sm:$0xff]   ;;  %v574_v52 = vld [vmem:[%s772_s6 + $0x28] sm:$0xff]   ;;  %v575_v53 = vld [vmem:[%s772_s6 + $0x30] sm:$0xff]   ;;  %528 = vmatprep.mubr.msk.bf16.mxu0 %vm638_vm4, %v637_v9  ;;  %s460_s21 = sshll.u32 %s639_s20, 4  ;;  %vm452_vm5 = vcmask 25600   ;;  %s461_s21 = int_to_ptr.vmem [resolvable:$true] %s460_s21 }
  0x1e   :  { %514 = vmatprep.subr.bf16.mxu0 %v637_v9  ;;  %v576_v54 = vld [vmem:[%s772_s6 + $0x38] sm:$0xff]   ;;  %v204_v56 = vsub.s32 0, %v203_v55  ;;  %v200_v57 = vld [vmem:[%s771_s5] sm:$0x3]  ;;  %v208_v3 = vsub.s32 1, %v203_v55  ;;  %s607_s22 = scalar_lea.vmem %s461_s21, 32  ;;  %p612_p9 = scmp.lt.s32.totalorder %s461_s21, %s461_s21 }
  0x1f   :  { %p608_p8 = scmp.ne.s32.totalorder %s461_s21, %s607_s22  ;;  %p613_p10 = scmp.lt.s32.totalorder %s607_s22, %s607_s22 }
  0x20   :  { %v205_v58 = vrot.slane %v200_v57, %v204_v56  ;;  %v209_v4 = vrot.slane %v200_v57, %v208_v3 }
  0x21   :  { %515 = vmatpush3.bf16.msra.mxu0 %v570_v48  ;;  %p614_p11 = por %p613_p10, %p612_p9 }
  0x22   :  { %516 = vmatprep.subr.bf16.mxu0 %v637_v9 }
  0x23   :  { %p615_p12 = pnand %p614_p11, %p608_p8 }
  0x25   :  { %517 = vmatpush3.bf16.msra.mxu0 %v571_v49 }
  0x26   :  { %518 = vmatprep.subr.bf16.mxu0 %v637_v9 }
  0x29   :  { %519 = vmatpush3.bf16.msra.mxu0 %v572_v50 }
  0x2a   :  { %520 = vmatprep.subr.bf16.mxu0 %v637_v9 }
  0x2d   :  { %521 = vmatpush3.bf16.msra.mxu0 %v573_v51 }
  0x2e   :  { %522 = vmatprep.subr.bf16.mxu0 %v637_v9 }
  0x31   :  { %523 = vmatpush3.bf16.msra.mxu0 %v574_v52 }
  0x32   :  { %524 = vmatprep.subr.bf16.mxu0 %v637_v9 }
  0x35   :  { %525 = vmatpush3.bf16.msra.mxu0 %v575_v53 }
  0x36   :  { %526 = vmatprep.subr.bf16.mxu0 %v637_v9 }
  0x39   :  { %527 = vmatpush3.bf16.msra.mxu0 %v576_v54 }
  0x94   :  { %v52_v12 = vpop.permute.xlu0 %51 }
  0x95   :  { %vm53_vm2 = vcmp.eq.s32.totalorder %v49_v11, %v52_v12 }
  0x96   :  { %v469_v13 = vsel %vm53_vm2, 1.0, %v637_v9  ;;  %v494_v9 = vld [vmem:[%s773_s7] ss:$0 sm:$0xff] }
  0x97   :  { %v56_v14 = vpack.c.bf16 %v469_v13, %v469_v13 }
  0x99   :  { %472 = vmatmul.mubr.msk.bf16.vlgmr.msra.gmra.mrb[0].mxu1 %vm70_vm3, %v56_v14 }
  0x9a   :  { %324 = vmatprep.mubr.bf16.mxu1 %v636_v0  ;;  %293 = vmatpush1.bf16.msra.mxu1 %v545_v16 }
  0x9b   :  { %294 = vmatprep.subr.bf16.mxu1 %v550_v19 }
  0x9e   :  { %295 = vmatpush1.bf16.msra.mxu1 %v548_v21 }
  0x9f   :  { %296 = vmatprep.subr.bf16.mxu1 %v553_v23 }
  0xa2   :  { %297 = vmatpush1.bf16.msra.mxu1 %v551_v24 }
  0xa3   :  { %298 = vmatprep.subr.bf16.mxu1 %v556_v25 }
  0xa6   :  { %299 = vmatpush1.bf16.msra.mxu1 %v554_v26 }
  0xa7   :  { %300 = vmatprep.subr.bf16.mxu1 %v559_v27 }
  0xaa   :  { %301 = vmatpush1.bf16.msra.mxu1 %v557_v28 }
  0xab   :  { %302 = vmatprep.subr.bf16.mxu1 %v562_v29 }
  0xae   :  { %303 = vmatpush1.bf16.msra.mxu1 %v560_v30 }
  0xaf   :  { %304 = vmatprep.subr.bf16.mxu1 %v565_v31 }
  0xb2   :  { %305 = vmatpush1.bf16.msra.mxu1 %v563_v32 }
  0xb3   :  { %306 = vmatprep.subr.bf16.mxu1 %v568_v33 }
  0xb6   :  { %307 = vmatpush1.bf16.msra.mxu1 %v566_v34 }
  0xee   :  { %v169_v17 = vpop.f32.mrb[0].mxu0 }
  0xef   :  { %v171_v18 = vpop.f32.mrb[1].mxu0 }
  0xf0   :  { %v173_v20 = vpop.f32.mrb[2].mxu0 }
  0xf1   :  { %v174_v22 = vpop.f32.mrb[3].mxu0 }
 0x16c   :  { %v108_v35 = vpop.f32.mrb[0].mxu1 }
 0x16d   :  { %v170_v36 = vadd.f32 %v169_v17, %v108_v35  ;;  %v110_v37 = vpop.f32.mrb[1].mxu1 }
 0x16e   :  { %v172_v38 = vadd.f32 %v171_v18, %v110_v37  ;;  %v112_v39 = vpop.f32.mrb[2].mxu1 }
 0x16f   :  { %v476_v40 = vmul.f32 -1.442695, %v170_v36  ;;  %v113_v41 = vpop.f32.mrb[3].mxu1 }
 0x171   :  { %577 = vpow2.f32 %v476_v40 }
 0x17b   :  { %v578_v42 = vpop.eup %577 }
 0x17c   :  { %v179_v43 = vadd.f32 1.0, %v578_v42 }
 0x17e   :  { %579 = vrcp.f32 %v179_v43 }
 0x188   :  { %v580_v44 = vpop.eup %579 }
 0x189   :  { %v182_v45 = vmul.f32 %v580_v44, %v172_v38 }
 0x18b   :  { %v183_v46 = vpack.c.bf16 %v182_v45, %v182_v45 }
 0x18d   :  { %325 = vmatmul.mubr.bf16.vlgmr.msra.gmra.mrb[4].mxu1 %v183_v46 }
 0x260   :  { %v326_v59 = vpop.f32.mrb[4].mxu1 }
 0x261   :  { %v327_v60 = vadd.f32 %v326_v59, %v205_v58  ;;  %v328_v61 = vpop.f32.mrb[5].mxu1 }
 0x262   :  { %v330_v62 = vpop.f32.mrb[6].mxu1  ;;  %v329_v5 = vadd.f32 %v328_v61, %v209_v4 }
 0x263   :  { %v493_v63 = vmul.f32 -1.442695, %v327_v60  ;;  %v331_v0 = vpop.f32.mrb[7].mxu1 }
 0x265   :  { %581 = vpow2.f32 %v493_v63 }
 0x26f   :  { %v582_v1 = vpop.eup %581 }
 0x270   :  { %v336_v2 = vadd.f32 1.0, %v582_v1 }
 0x272   :  { %583 = vrcp.f32 %v336_v2 }
 0x27c   :  { %v584_v6 = vpop.eup %583 }
 0x27d   :  { %v339_v7 = vmul.f32 %v584_v6, %v329_v5 }
 0x27f   :  { %v340_v8 = vpack.c.bf16 %v339_v7, %v339_v7 }
 0x281   :  { %529 = vmatmul.mubr.bf16.vlgmr.msra.gmra.mrb[4].mxu0 %v340_v8 }
 0x354   :  { %v446_v10 = vpop.f32.mrb[4].mxu0 }
 0x355   :  { %v447_v11 = vadd.f32 %v494_v9, %v446_v10  ;;  %v530_v12 = vpop.f32.mrb[5].mxu0 }
 0x356   :  { %v449_v13 = vpop.f32.mrb[6].mxu0 }
 0x357   :  { %v531_v14 = vpop.f32.mrb[7].mxu0  ;;  %453 = vst.msk [vmem:[#allocation5] sm:$0x3] %vm452_vm5, %v447_v11 }
 0x358   :  { %618 = shalt.err (!%p615_p12)
}
 0x359   :  { %s619_s7 = scalar_lea.hbm %s774_s8, 32 }
 0x35a   :  { %p620_p13 = scmp.ne.s32.totalorder %s774_s8, %s619_s7  ;;  %p623_p0 = scmp.lt.u32.totalorder %s619_s7, %s774_s8 }
 0x35c   :  { %p625_p1 = pnand %p623_p0, %p620_p13 }
 0x35e   :  { %628 = shalt.err (!%p625_p1)
}
 0x35f   :  { %463 = dma.vmem_to_hbm [thread:$0]  %s461_s21, 32, %s774_s8, [#allocation4]  }
 0x360   :  { %631 = dma.done.wait [#allocation4], 32  }
 0x361   :  { %632 = vsyncadd [#allocation4], 4294967264 }
 0x362   :  { %467 = vsyncpa [#allocation3], 1 }
 0x363   :  { %468 = vsyncpa [#allocation4], 1 }

</bundles_post_ra>
